<compile_context>
chip_gen: v7x
topology: tpu7x:2x2x1
jax: 0.10.0
libtpu: 0.0.40
codegen_flags: <defaults>
</compile_context>

<pallas_src>
import math

import jax
import jax.numpy as jnp
from jax import lax
from jax.experimental import pallas as pl
from jax.experimental.pallas import tpu as pltpu

# PGGAN resolution -> (in_ch, out_ch) table (standard progressive-GAN channel map)
resl_to_ch = {
    4: (512, 512),
    8: (512, 512),
    16: (512, 512),
    32: (512, 512),
    64: (256, 256),
    128: (128, 128),
    256: (64, 64),
    512: (32, 32),
    1024: (16, 16),
}


def _from_rgb_kernel(x_ref, w_ref, b_ref, o_ref):
    """One (batch, spatial-tile) grid step of the 1x1 conv.

    x_ref: (C_in, T)   lane-dense pixel tile (T multiple of 128)
    w_ref: (C_out, C_in)  pre-scaled weight (EqualizedLR folded in wrapper)
    b_ref: (C_out, 1)
    o_ref: (C_out, T)  lane-dense output tile
    """
    c_in = x_ref.shape[0]
    c_out, t = o_ref.shape

    x = x_ref[...]                  # (C_in, T)
    w = w_ref[...]                  # (C_out, C_in)

    # C_in is tiny (3 for RGB): do the contraction as C_in broadcast FMAs on the
    # VPU instead of pushing a nearly-empty matmul through the MXU. The output
    # stays (C_out, T) lane-dense, so stores are full-width.
    acc = jnp.broadcast_to(b_ref[...], (c_out, t))          # f32
    for k in range(c_in):                                   # unrolled at trace time
        acc = acc + w[:, k:k + 1] * x[k:k + 1, :]
    o_ref[...] = acc.astype(o_ref.dtype)


def from_rgb_forward(x, weight, bias, *, block_hw=2048):
    """EqualizedLR 1x1 conv (PGGAN FromRGBLayer), computed natively in NCHW.

    x: (N, C_in, H, W) float32, weight: (C_out, C_in, 1, 1), bias: (C_out,).
    Returns (N, C_out, H, W) float32.
    """
    assert block_hw % 128 == 0 and block_hw >= 128
    n, c_in, h, w_sp = x.shape
    c_out = weight.shape[0]
    hw = h * w_sp

    # EqualizedLR: fold the runtime scale into the (C_out x C_in) weight once,
    # outside the kernel (a ~100-element multiply, negligible).
    fan_in = c_in * 1 * 1
    scale = math.sqrt(2.0 / fan_in)
    w2d = weight.reshape(c_out, c_in) * scale          # (C_out, C_in)
    b2d = bias.reshape(c_out, 1)                       # (C_out, 1)

    # NCHW -> (N, C_in, H*W) is a pure reshape: no transpose, no extra HBM traffic.
    x3 = x.reshape(n, c_in, hw)

    # Lane-dense spatial tile (multiple of 128). If H*W is not a multiple of the
    # tile, pad the spatial axis instead of asserting divisibility; padded columns
    # are sliced off after the kernel.
    t_hw = min(block_hw, pl.cdiv(hw, 128) * 128)
    hw_pad = pl.cdiv(hw, t_hw) * t_hw
    if hw_pad != hw:
        x3 = jnp.pad(x3, ((0, 0), (0, 0), (0, hw_pad - hw)))

    grid = (n, hw_pad // t_hw)

    y3 = pl.pallas_call(
        _from_rgb_kernel,
        out_shape=jax.ShapeDtypeStruct((n, c_out, hw_pad), x.dtype),
        grid_spec=pltpu.PrefetchScalarGridSpec(
            num_scalar_prefetch=0,
            grid=grid,
            in_specs=[
                # (1, C_in, T) pixel tile; leading batch dim squeezed away.
                pl.BlockSpec((None, c_in, t_hw), lambda b, j: (b, 0, j)),
                # Full pre-scaled weight / bias, resident across the whole grid.
                pl.BlockSpec((c_out, c_in), lambda b, j: (0, 0)),
                pl.BlockSpec((c_out, 1), lambda b, j: (0, 0)),
            ],
            out_specs=pl.BlockSpec((None, c_out, t_hw), lambda b, j: (b, 0, j)),
        ),
        compiler_params=pltpu.CompilerParams(
            # Both grid axes are independent -> megacore-shardable on v7x.
            dimension_semantics=("parallel", "parallel"),
        ),
    )(x3, w2d, b2d)

    if hw_pad != hw:
        y3 = y3[:, :, :hw]
    return y3.reshape(n, c_out, h, w_sp)


def _reference(x, weight, bias):
    c_in = x.shape[1]
    scale = math.sqrt(2.0 / c_in)
    w = weight * scale  # (C_out, C_in, 1, 1)
    y = lax.conv_general_dilated(
        x, w, window_strides=(1, 1), padding="VALID",
        dimension_numbers=("NCHW", "OIHW", "NCHW"),
        precision=lax.Precision.HIGHEST,
    )
    return y + bias.reshape(1, -1, 1, 1)


if __name__ == "__main__":
    # FromRGBLayer(resl=512, rgb_channel=3) -> out_c = 32  (as inside Discriminator)
    resl = 512
    rgb_channel = 3
    _, out_c = resl_to_ch[resl]

    key = jax.random.PRNGKey(0)
    kx, kw, kx2 = jax.random.split(key, 3)

    # EqualizedLR init: weight ~ N(0,1), bias = 0. Conv2d weight shape (out_c, in_c, 1, 1).
    weight = jax.random.normal(kw, (out_c, rgb_channel, 1, 1), dtype=jnp.float32)
    bias = jnp.zeros((out_c,), dtype=jnp.float32)

    # Case 1: spatial size that tiles exactly (H*W = 256, one lane-dense tile per image).
    x = jax.random.normal(kx, (2, rgb_channel, 16, 16), dtype=jnp.float32)
    y = jax.block_until_ready(from_rgb_forward(x, weight, bias))
    y_ref = _reference(x, weight, bias)
    assert y.shape == (2, out_c, 16, 16), y.shape
    assert jnp.allclose(y, y_ref, atol=1e-5, rtol=1e-5), float(jnp.max(jnp.abs(y - y_ref)))

    # Case 2: H*W = 4032 (not a multiple of 128) -> exercises the padded-tail path
    # and a multi-tile grid (2 spatial tiles of 2048).
    x2 = jax.random.normal(kx2, (1, rgb_channel, 72, 56), dtype=jnp.float32)
    y2 = jax.block_until_ready(from_rgb_forward(x2, weight, bias))
    y2_ref = _reference(x2, weight, bias)
    assert y2.shape == (1, out_c, 72, 56), y2.shape
    assert jnp.allclose(y2, y2_ref, atol=1e-5, rtol=1e-5), float(jnp.max(jnp.abs(y2 - y2_ref)))

    print("KERNEL_OK")
</pallas_src>

<mosaic_0001>
module attributes {stable_mosaic.version = 11 : i64} {
  func.func @_from_rgb_kernel(%arg0: i32, %arg1: i32, %arg2: memref<1x3x256xf32, #tpu.memory_space<vmem>>, %arg3: memref<32x3xf32, #tpu.memory_space<vmem>>, %arg4: memref<32x1xf32, #tpu.memory_space<vmem>>, %arg5: memref<1x32x256xf32, #tpu.memory_space<vmem>>) attributes {dimension_semantics = [#tpu.dimension_semantics<parallel>, #tpu.dimension_semantics<parallel>], iteration_bounds = array<i64: 2, 1>, scalar_prefetch = 0 : i64, scratch_operands = 0 : i64, tpu.core_type = #tpu.core_type<tc>, window_params = [{transform_indices = @transform_0, window_bounds = array<i64: 1, 3, 256>}, {pipeline_mode = #tpu.pipeline_mode<synchronous>, transform_indices = @transform_1, window_bounds = array<i64: 32, 3>}, {pipeline_mode = #tpu.pipeline_mode<synchronous>, transform_indices = @transform_2, window_bounds = array<i64: 32, 1>}, {transform_indices = @transform_3, window_bounds = array<i64: 1, 32, 256>}]} {
    %c0 = arith.constant 0 : index
    %c0_0 = arith.constant 0 : index
    %c0_1 = arith.constant 0 : index
    %0 = vector.load %arg2[%c0, %c0_0, %c0_1] : memref<1x3x256xf32, #tpu.memory_space<vmem>>, vector<1x3x256xf32>
    %1 = vector.shape_cast %0 : vector<1x3x256xf32> to vector<3x256xf32>
    %c0_2 = arith.constant 0 : index
    %c0_3 = arith.constant 0 : index
    %2 = vector.load %arg3[%c0_2, %c0_3] : memref<32x3xf32, #tpu.memory_space<vmem>>, vector<32x3xf32>
    %c0_4 = arith.constant 0 : index
    %c0_5 = arith.constant 0 : index
    %3 = vector.load %arg4[%c0_4, %c0_5] : memref<32x1xf32, #tpu.memory_space<vmem>>, vector<32x1xf32>
    %4 = vector.shape_cast %3 : vector<32x1xf32> to vector<32x1xf32>
    %5 = vector.broadcast %4 : vector<32x1xf32> to vector<32x256xf32>
    %6 = vector.extract_strided_slice %2 {offsets = [0, 0], sizes = [32, 1], strides = [1, 1]} : vector<32x3xf32> to vector<32x1xf32>
    %7 = vector.extract_strided_slice %1 {offsets = [0, 0], sizes = [1, 256], strides = [1, 1]} : vector<3x256xf32> to vector<1x256xf32>
    %8 = vector.broadcast %6 : vector<32x1xf32> to vector<32x256xf32>
    %9 = vector.broadcast %7 : vector<1x256xf32> to vector<32x256xf32>
    %10 = arith.mulf %8, %9 : vector<32x256xf32>
    %11 = arith.addf %5, %10 : vector<32x256xf32>
    %12 = vector.extract_strided_slice %2 {offsets = [0, 1], sizes = [32, 1], strides = [1, 1]} : vector<32x3xf32> to vector<32x1xf32>
    %13 = vector.extract_strided_slice %1 {offsets = [1, 0], sizes = [1, 256], strides = [1, 1]} : vector<3x256xf32> to vector<1x256xf32>
    %14 = vector.broadcast %12 : vector<32x1xf32> to vector<32x256xf32>
    %15 = vector.broadcast %13 : vector<1x256xf32> to vector<32x256xf32>
    %16 = arith.mulf %14, %15 : vector<32x256xf32>
    %17 = arith.addf %11, %16 : vector<32x256xf32>
    %18 = vector.extract_strided_slice %2 {offsets = [0, 2], sizes = [32, 1], strides = [1, 1]} : vector<32x3xf32> to vector<32x1xf32>
    %19 = vector.extract_strided_slice %1 {offsets = [2, 0], sizes = [1, 256], strides = [1, 1]} : vector<3x256xf32> to vector<1x256xf32>
    %20 = vector.broadcast %18 : vector<32x1xf32> to vector<32x256xf32>
    %21 = vector.broadcast %19 : vector<1x256xf32> to vector<32x256xf32>
    %22 = arith.mulf %20, %21 : vector<32x256xf32>
    %23 = arith.addf %17, %22 : vector<32x256xf32>
    %c0_6 = arith.constant 0 : index
    %c0_7 = arith.constant 0 : index
    %c0_8 = arith.constant 0 : index
    %24 = vector.load %arg5[%c0_6, %c0_7, %c0_8] : memref<1x32x256xf32, #tpu.memory_space<vmem>>, vector<1x32x256xf32>
    %25 = vector.shape_cast %24 : vector<1x32x256xf32> to vector<32x256xf32>
    %26 = vector.shape_cast %23 : vector<32x256xf32> to vector<1x32x256xf32>
    tpu.vector_store %arg5[%c0_6, %c0_7, %c0_8], %26 {strides = array<i32>} : memref<1x32x256xf32, #tpu.memory_space<vmem>>, vector<1x32x256xf32>,
    return
  }
  func.func @transform_0(%arg0: i32, %arg1: i32) -> (i32, i32, i32) {
    %c0_i32 = arith.constant 0 : i32
    %c0_i32_0 = arith.constant 0 : i32
    return %arg0, %c0_i32, %arg1 : i32, i32, i32
  }
  func.func @transform_1(%arg0: i32, %arg1: i32) -> (i32, i32) {
    %c0_i32 = arith.constant 0 : i32
    %c0_i32_0 = arith.constant 0 : i32
    %c0_i32_1 = arith.constant 0 : i32
    return %c0_i32, %c0_i32_0 : i32, i32
  }
  func.func @transform_2(%arg0: i32, %arg1: i32) -> (i32, i32) {
    %c0_i32 = arith.constant 0 : i32
    %c0_i32_0 = arith.constant 0 : i32
    %c0_i32_1 = arith.constant 0 : i32
    return %c0_i32, %c0_i32_0 : i32, i32
  }
  func.func @transform_3(%arg0: i32, %arg1: i32) -> (i32, i32, i32) {
    %c0_i32 = arith.constant 0 : i32
    %c0_i32_0 = arith.constant 0 : i32
    return %arg0, %c0_i32, %arg1 : i32, i32, i32
  }
}

</mosaic_0001>

<bundles_post_ra>
// kernel: tpu_custom_call.1
= control target key start
LH: loop header
LB: loop body
LE: loop exit
PB: predicated region body
PF: predicated region fallthrough
CT: control target
= control target key end

     0   :  { %8 = vsyncpa [#allocation3], 0  ;;  %s825_s0 = inlined_call_operand.vmem [shape: f32[2,3,256], index: 0, kind: input, shape index: {}]   ;;  %s826_s1 = inlined_call_operand.vmem [shape: f32[32,3], index: 1, kind: input, shape index: {}]   ;;  %s827_s2 = inlined_call_operand.vmem [shape: f32[32,1], index: 2, kind: input, shape index: {}]   ;;  %s828_s3 = inlined_call_operand.hbm [shape: f32[2,32,256], index: 3, kind: output, shape index: {}]  }
   0x1   :  { %10 = vsyncpa [#allocation3 + $0x1], 0  ;;  %s674_s12 = smov 0   ;;  %s676_s13 = smov 0  }
   0x2   :  { %s678_s14 = smov 0   ;;  %s680_s15 = smov 0  }
   0x3   :  { %s682_s16 = smov 0   ;;  %s684_s17 = smov 0  }
   0x4 LB: > { %s487_s18 = sadd.s32 4294967295, %s646_s17   ;;  %s488_s19 = sadd.s32 4294967294, %s646_s17   ;;  %s646_s17 = sphi %s684_s17, %s16_s17   ;;  %s642_s16 = sphi %s682_s16, %s835_s16   ;;  %s638_s15 = sphi %s680_s15, %s834_s15   ;;  %s634_s14 = sphi %s678_s14, %s833_s14   ;;  %s630_s13 = sphi %s676_s13, %s832_s13   ;;  %s626_s12 = sphi %s674_s12, %s831_s12  }
   0x5   : > { %s28_s20 = sadd.s32 1, %s642_s16  ;;  %s107_s21 = sadd.s32 1, %s634_s14 }
   0x6   : > { %p30_p0 = scmp.ge.s32.totalorder %s28_s20, 2  ;;  %p117_p1 = scmp.ne.s32.totalorder %s634_s14, %s630_s13 }
   0x7   : > { %p118_p2 = scmp.eq.s32.totalorder %s487_s18, 1  ;;  %p123_p3 = scmp.ne.s32.totalorder %s630_s13, %s626_s12 }
   0x8   : > { %s837_s20 = smov (%p30_p0, %s28_s20), 0  ;;  %p124_p5 = scmp.eq.s32.totalorder %s488_s19, 1 }
   0x9   : > { %p714_p4 = por %p118_p2, %p117_p1  ;;  %s102_s23 = ssub.s32 %s642_s16, %s837_s20 }
   0xa   : > { %p491_p6 = scmp.ge.s32.totalorder %s646_s17, 1  ;;  %p105_p7 = scmp.eq.s32.totalorder %s102_s23, 0 }
   0xb   : > { %p721_p8 = por %p124_p5, %p123_p3  ;;  %p161_p9 = scmp.lt.s32.totalorder %s646_s17, 3 }
   0xc   : > { %s727_s25 = scalar_select %p105_p7, %s634_s14, %s107_s21  }
   0xd   : > { %p162_p10 = pnand %p491_p6, %p161_p9 }
   0xe   : > { %v203_v0 = vld [vmem:[%s826_s1 + $0x10] sm:$0xff] (!%p162_p10)  ;;  %v201_v1 = vld [vmem:[%s826_s1] sm:$0xff] (!%p162_p10)  ;;  %v648_v2 = vmov (!%p162_p10), 0   ;;  %v204_v3 = vld [vmem:[%s826_s1 + $0x18] sm:$0xff] (!%p162_p10)  ;;  %v649_v9 = vmov (!%p162_p10), 1   ;;  %v650_v10 = vmov (!%p162_p10), 2   ;;  %v250_v13 = vlaneseq (!%p162_p10) }
   0xf   : > { %165 = sbr.rel (%p162_p10) target bundleno = 197 (0xc5), region = 32  ;;  %563 = vset.pattern.permute.xlu1 (!%p162_p10), %v648_v2  ;;  %562 = vset.pattern.permute.xlu0 (!%p162_p10), %v648_v2  ;;  %v202_v4 = vld [vmem:[%s826_s1 + $0x8] sm:$0xff] (!%p162_p10)  ;;  %v205_v6 = vld [vmem:[%s827_s2] sm:$0xff] (!%p162_p10)  ;;  %v208_v7 = vld [vmem:[%s827_s2 + $0x18] sm:$0xff] (!%p162_p10)  ;;  %p190_p11 = scmp.lt.s32.totalorder (!%p162_p10), %s638_s15, 1 }
  0x10   : > { %241 = vperm.xlu1 (!%p162_p10), %563, %v203_v0   ;;  %231 = vperm.xlu0 (!%p162_p10), %562, %v201_v1   ;;  %v206_v5 = vld [vmem:[%s827_s2 + $0x8] sm:$0xff] (!%p162_p10)  ;;  %v207_v8 = vld [vmem:[%s827_s2 + $0x10] sm:$0xff] (!%p162_p10)  ;;  %v251_v16 = vshrl.u32 (!%p162_p10), %v250_v13, 7  ;;  %s186_s30 = sand.u32 (!%p162_p10), 1, %s630_s13   ;;  %s501_s6 = sshll.u32 (!%p162_p10), %s638_s15, 10 }
  0x11   : > { %s492_s4 = sshll.u32 (!%p162_p10), %s186_s30, 6  ;;  %s773_s10 = scalar_lea.hbm (!%p162_p10), %s828_s3, %s501_s6 }
  0x12   : > { %v252_v19 = vsub.s32 (!%p162_p10), 0, %v251_v16  ;;  %v256_v20 = vsub.s32 (!%p162_p10), 4, %v251_v16  ;;  %v302_v21 = vsub.s32 (!%p162_p10), 1, %v251_v16  ;;  %v306_v22 = vsub.s32 (!%p162_p10), 5, %v251_v16  ;;  %s188_s5 = scalar_lea.vmem (!%p162_p10), [#allocation2], %s492_s4  ;;  %s651_s18 = smov (!%p162_p10), [#allocation2]  }
  0x13   : > { %v352_v30 = vsub.s32 (!%p162_p10), 2, %v251_v16  ;;  %v356_v31 = vsub.s32 (!%p162_p10), 6, %v251_v16  ;;  %s408_s7 = sshll.u32 (!%p162_p10), %s188_s5, 4  ;;  %s572_s19 = sshll.u32 (!%p162_p10), %s651_s18, 4  ;;  %s775_s7 = int_to_ptr.vmem [resolvable:$true] %s408_s7  ;;  %s573_s19 = int_to_ptr.vmem [resolvable:$false] %s572_s19 }
  0x14   : > { %246 = vperm.xlu1 (!%p162_p10), %563, %v204_v3   ;;  %236 = vperm.xlu0 (!%p162_p10), %562, %v202_v4   ;;  %s568_s11 = scalar_lea.vmem (!%p162_p10), %s775_s7, 1024  ;;  %s574_s21 = scalar_lea.vmem (!%p162_p10), %s573_s19, 2048 }
  0x15   : > { %p569_p12 = scmp.ne.s32.totalorder (!%p162_p10), %s775_s7, %s568_s11  ;;  %p575_p1 = scmp.lt.s32.totalorder (!%p162_p10), %s775_s7, %s573_s19 }
  0x16   : > { %s191_s23 = scalar_select %p190_p11, %s638_s15, 1 }
  0x17   : > { %s779_s15 = scalar_lea.sflag [#allocation3], %s186_s30  ;;  %p570_p13 = pnand %p569_p12, %p714_p4 }
  0x18   : > { %216 = vperm.xlu1 %563, %v206_v5   ;;  %211 = vperm.xlu0 %562, %v205_v6   ;;  %s500_s26 = sshll.u32 %s191_s23, 3  ;;  %p576_p2 = scmp.lt.s32.totalorder %s574_s21, %s568_s11 }
  0x19   : > { %s197_s29 = scalar_lea.vmem %s825_s0, %s500_s26  ;;  %p571_p0 = pneg %p570_p13 }
  0x1a   : > { %v200_v23 = vld [vmem:[%s197_s29] sm:$0x77]  ;;  %p577_p3 = por %p576_p2, %p575_p1 }
  0x1b   : > { %v253_v26 = vrot.slane %v200_v23, %v252_v19  ;;  %v257_v27 = vrot.slane %v200_v23, %v256_v20  ;;  %v303_v28 = vrot.slane %v200_v23, %v302_v21  ;;  %v307_v29 = vrot.slane %v200_v23, %v306_v22 }
  0x1c   : > { %226 = vperm.xlu1 %563, %v208_v7   ;;  %221 = vperm.xlu0 %562, %v207_v8   ;;  %v353_v40 = vrot.slane %v200_v23, %v352_v30  ;;  %v357_v41 = vrot.slane %v200_v23, %v356_v31  ;;  %p578_p5 = pnand %p577_p3, %p571_p0 }
  0x1d   : > { %v263_v32 = vrot.slane %v253_v26, %v252_v19  ;;  %v267_v33 = vrot.slane %v257_v27, %v252_v19  ;;  %v313_v35 = vrot.slane %v303_v28, %v302_v21  ;;  %v317_v36 = vrot.slane %v307_v29, %v302_v21 }
  0x1e   : > { %v363_v52 = vrot.slane %v353_v40, %v352_v30  ;;  %v367_v53 = vrot.slane %v357_v41, %v352_v30 }
  0x20   : > { %565 = vset.pattern.permute.xlu1 %v649_v9  ;;  %564 = vset.pattern.permute.xlu0 %v649_v9 }
  0x21   : > { %289 = vperm.xlu1 %565, %v202_v4   ;;  %285 = vperm.xlu0 %564, %v201_v1  }
  0x25   : > { %293 = vperm.xlu1 %565, %v203_v0   ;;  %297 = vperm.xlu0 %564, %v204_v3  }
  0x29   : > { %566 = vset.pattern.permute.xlu1 %v650_v10  ;;  %567 = vset.pattern.permute.xlu0 %v650_v10 }
  0x2a   : > { %335 = vperm.xlu1 %566, %v201_v1   ;;  %339 = vperm.xlu0 %567, %v202_v4  }
  0x2e   : > { %343 = vperm.xlu1 %566, %v203_v0  }
  0x32   : > { %347 = vperm.xlu1 %566, %v204_v3  }
  0x8f   : > { %v242_v11 = vpop.permute.xlu1 %241  ;;  %v232_v12 = vpop.permute.xlu0 %231 }
  0x90   : > { %v268_v42 = vmul.f32 %v263_v32, %v232_v12  ;;  %v269_v43 = vmul.f32 %v267_v33, %v232_v12  ;;  %v272_v56 = vmul.f32 %v263_v32, %v242_v11  ;;  %v273_v57 = vmul.f32 %v267_v33, %v242_v11 }
  0x93   : > { %v755_v14 = vpop.permute.xlu1 %246  ;;  %v237_v15 = vpop.permute.xlu0 %236 }
  0x94   : > { %v270_v38 = vmul.f32 %v263_v32, %v237_v15  ;;  %v271_v39 = vmul.f32 %v267_v33, %v237_v15  ;;  %v274_v12 = vmul.f32 %v263_v32, %v755_v14  ;;  %v275_v13 = vmul.f32 %v267_v33, %v755_v14 }
  0x97   : > { %v217_v17 = vpop.permute.xlu1 %216  ;;  %v212_v18 = vpop.permute.xlu0 %211 }
  0x98   : > { %v278_v50 = vadd.f32 %v270_v38, %v217_v17  ;;  %v279_v51 = vadd.f32 %v271_v39, %v217_v17  ;;  %v276_v54 = vadd.f32 %v268_v42, %v212_v18  ;;  %v277_v55 = vadd.f32 %v269_v43, %v212_v18 }
  0x9b   : > { %v760_v24 = vpop.permute.xlu1 %226  ;;  %v222_v25 = vpop.permute.xlu0 %221 }
  0x9c   : > { %v280_v6 = vadd.f32 %v272_v56, %v222_v25  ;;  %v281_v7 = vadd.f32 %v273_v57, %v222_v25  ;;  %v282_v22 = vadd.f32 %v274_v12, %v760_v24  ;;  %v283_v23 = vadd.f32 %v275_v13, %v760_v24 }
  0xa0   : > { %v290_v34 = vpop.permute.xlu1 %289  ;;  %v286_v37 = vpop.permute.xlu0 %285 }
  0xa1   : > { %v320_v44 = vmul.f32 %v313_v35, %v290_v34  ;;  %v321_v45 = vmul.f32 %v317_v36, %v290_v34  ;;  %v318_v48 = vmul.f32 %v313_v35, %v286_v37  ;;  %v319_v49 = vmul.f32 %v317_v36, %v286_v37 }
  0xa3   : > { %v328_v58 = vadd.f32 %v320_v44, %v278_v50  ;;  %v329_v59 = vadd.f32 %v321_v45, %v279_v51  ;;  %v326_v60 = vadd.f32 %v318_v48, %v276_v54  ;;  %v327_v61 = vadd.f32 %v319_v49, %v277_v55 }
  0xa4   : > { %v294_v46 = vpop.permute.xlu1 %293  ;;  %v298_v47 = vpop.permute.xlu0 %297 }
  0xa5   : > { %v322_v62 = vmul.f32 %v313_v35, %v294_v46  ;;  %v323_v63 = vmul.f32 %v317_v36, %v294_v46  ;;  %v324_v15 = vmul.f32 %v313_v35, %v298_v47  ;;  %v325_v16 = vmul.f32 %v317_v36, %v298_v47 }
  0xa7   : > { %v330_v18 = vadd.f32 %v322_v62, %v280_v6  ;;  %v331_v19 = vadd.f32 %v323_v63, %v281_v7  ;;  %v332_v27 = vadd.f32 %v324_v15, %v282_v22  ;;  %v333_v28 = vadd.f32 %v325_v16, %v283_v23 }
  0xa9   : > { %v336_v0 = vpop.permute.xlu1 %335  ;;  %v340_v1 = vpop.permute.xlu0 %339 }
  0xaa   : > { %v368_v2 = vmul.f32 %v363_v52, %v336_v0  ;;  %v369_v3 = vmul.f32 %v367_v53, %v336_v0  ;;  %v370_v4 = vmul.f32 %v363_v52, %v340_v1  ;;  %v371_v5 = vmul.f32 %v367_v53, %v340_v1 }
  0xac   : > { %v376_v8 = vadd.f32 %v368_v2, %v326_v60  ;;  %v377_v9 = vadd.f32 %v369_v3, %v327_v61  ;;  %v378_v10 = vadd.f32 %v370_v4, %v328_v58  ;;  %v379_v11 = vadd.f32 %v371_v5, %v329_v59 }
  0xad   : > { %v344_v17 = vpop.permute.xlu1 %343 }
  0xae   : > { %384 = vst [vmem:[%s188_s5] sm:$0xff] %v376_v8  ;;  %385 = vst [vmem:[%s188_s5 + $0x8] sm:$0xff] %v377_v9  ;;  %v372_v20 = vmul.f32 %v363_v52, %v344_v17  ;;  %v373_v21 = vmul.f32 %v367_v53, %v344_v17 }
  0xaf   : > { %386 = vst [vmem:[%s188_s5 + $0x10] sm:$0xff] %v378_v10  ;;  %387 = vst [vmem:[%s188_s5 + $0x18] sm:$0xff] %v379_v11 }
  0xb0   : > { %v380_v25 = vadd.f32 %v372_v20, %v330_v18  ;;  %v381_v26 = vadd.f32 %v373_v21, %v331_v19 }
  0xb1   : > { %v348_v14 = vpop.permute.xlu1 %347 }
  0xb2   : > { %388 = vst [vmem:[%s188_s5 + $0x20] sm:$0xff] %v380_v25  ;;  %389 = vst [vmem:[%s188_s5 + $0x28] sm:$0xff] %v381_v26  ;;  %v374_v29 = vmul.f32 %v363_v52, %v348_v14  ;;  %v375_v30 = vmul.f32 %v367_v53, %v348_v14 }
  0xb4   : > { %v382_v24 = vadd.f32 %v374_v29, %v332_v27  ;;  %v383_v31 = vadd.f32 %v375_v30, %v333_v28 }
  0xb6   : > { %390 = vst [vmem:[%s188_s5 + $0x30] sm:$0xff] %v382_v24  ;;  %391 = vst [vmem:[%s188_s5 + $0x38] sm:$0xff] %v383_v31 }
  0xb7   : > { %581 = shalt.err (!%p578_p5)
}
  0xb8   : > { %s582_s23 = scalar_lea.hbm %s773_s10, 1024  ;;  %s586_s28 = scalar_lea.hbm %s828_s3, 2048 }
  0xb9   : > { %p583_p6 = scmp.ne.s32.totalorder %s773_s10, %s582_s23  ;;  %p587_p10 = scmp.lt.u32.totalorder %s773_s10, %s828_s3 }
  0xba   : > { %p588_p11 = scmp.lt.u32.totalorder %s586_s28, %s582_s23  ;;  %p590_p13 = scmp.lt.u32.totalorder %s582_s23, %s773_s10 }
  0xbb   : > { %p584_p7 = pnand %p583_p6, %p714_p4 }
  0xbc   : > { %p589_p12 = por %p588_p11, %p587_p10 }
  0xbd   : > { %p585_p9 = pneg %p584_p7 }
  0xbe   : > { %p591_p0 = por %p590_p13, %p589_p12 }
  0xc0   : > { %p592_p1 = pnand %p591_p0, %p585_p9 }
  0xc2   : > { %595 = shalt.err (!%p592_p1)
}
  0xc3   : > { %s652_s4 = smov 256   ;;  %s653_s5 = smov 16  }
  0xc4   : > { %502 = dma.vmem_to_hbm [thread:$0]  (%p714_p4), %s775_s7, 1024, %s773_s10, %s779_s15, %s652_s4, %s652_s4, %s653_s5  }
  0xc5 PF: > { %p508_p2 = scmp.ge.s32.totalorder %s646_s17, 2  ;;  %s423_s6 = sand.u32 1, %s626_s12  }
  0xc6   : > { %s424_s8 = scalar_lea.sflag [#allocation3], %s423_s6 }
  0xc7   : > { %p505_p3 = pnand %p508_p2, %p721_p8 }
  0xc9   : > { %621 = dma.done.wait (!%p505_p3), %s424_s8, 1024  }
  0xca   : > { %623 = vsyncadd (!%p505_p3), %s424_s8, 4294966272  ;;  %s16_s17 = sadd.s32 1, %s646_s17   ;;  %s831_s12 = smov %s630_s13 }
  0xcb   : > { %p13_p5 = scmp.ge.s32.totalorder %s16_s17, 4   ;;  %s832_s13 = smov %s634_s14 }
  0xcc   : > { %s833_s14 = smov %s727_s25  ;;  %s834_s15 = smov %s642_s16 }
  0xcd   : > { %s835_s16 = smov %s837_s20  ;;  %15 = sbr.rel (!%p13_p5) target bundleno = 4 (0x4), region = 67 }
  0xd4   :  { %429 = vsyncpa [#allocation3], 1 }
  0xd5   :  { %431 = vsyncpa [#allocation3 + $0x1], 1 }

</bundles_post_ra>
